<compile_context>
chip_gen: v7x
topology: tpu7x:2x2x1
jax: 0.10.0
libtpu: 0.0.40
codegen_flags: <defaults>
</compile_context>

<pallas_src>
import functools

import jax
import jax.numpy as jnp
from jax import lax
from jax.experimental import pallas as pl
from jax.experimental.pallas import tpu as pltpu


# ---------------------------------------------------------------------------
# Weight packing helpers
# ---------------------------------------------------------------------------
_GATE_PERM = (0, 1, 3, 2)   # PyTorch gate order [i,f,g,o] -> packed [i,f,o,g]
                            # (sigmoid gates contiguous, tanh gate last)


def _pack_gates(w):
    """(4, D, H) per-gate weights (PyTorch order [i,f,g,o]) -> (D, 4H) packed."""
    w = jnp.stack([w[g] for g in _GATE_PERM], axis=0)          # (4, D, H)
    d, h = w.shape[1], w.shape[2]
    return jnp.transpose(w, (1, 0, 2)).reshape(d, 4 * h)       # (D, 4H)


def _round_up(x, m):
    return ((x + m - 1) // m) * m


# ---------------------------------------------------------------------------
# Fused decoder-step kernel: embedding + all LSTM layers + fc_out
# ---------------------------------------------------------------------------
def _make_decoder_step_kernel(n_layers, hidden_dim, vocab_pad, in_dim):
    H = hidden_dim

    def kernel(tok_ref, h0_ref, c0_ref, emb_ref, wx_ref, wh_ref, b_ref,
               wfc_ref, bfc_ref, pred_ref, h_out_ref, c_out_ref):
        B = tok_ref.shape[0]

        # ---- Embedding lookup as a one-hot MXU matmul (no gather) --------
        tok = tok_ref[...]                                      # (B, 1) int32
        lane_ids = lax.broadcasted_iota(jnp.int32, (B, vocab_pad), 1)
        onehot = (lane_ids == tok).astype(jnp.float32)          # (B, Vpad)
        x = jnp.dot(onehot, emb_ref[...],
                    preferred_element_type=jnp.float32)         # (B, in_dim)

        # ---- n_layers LSTM cells (one timestep), statically unrolled -----
        h_new = None
        for l in range(n_layers):
            h_prev = h0_ref[l]                                  # (B, H)
            c_prev = c0_ref[l]                                  # (B, H)
            # Two lane-dense (., 4H=128) matmuls per layer.
            z = (jnp.dot(x, wx_ref[l], preferred_element_type=jnp.float32)
                 + jnp.dot(h_prev, wh_ref[l],
                           preferred_element_type=jnp.float32)
                 + b_ref[l])                                    # (B, 4H)
            # Block-wise activations, packed gate order [i, f, o, g].
            zs = jax.nn.sigmoid(z[:, :3 * H])                   # (B, 3H)
            g = jnp.tanh(z[:, 3 * H:])                          # (B, H)
            i = zs[:, :H]
            f = zs[:, H:2 * H]
            o = zs[:, 2 * H:3 * H]

            c_new = f * c_prev + i * g
            h_new = o * jnp.tanh(c_new)

            h_out_ref[l] = h_new
            c_out_ref[l] = c_new
            # TODO(synk): inter-layer dropout (training-only in nn.LSTM) is
            # not applied; this reproduces eval-mode semantics.
            if H < in_dim:                                      # static check
                x = jnp.pad(h_new, ((0, 0), (0, in_dim - H)))
            else:
                x = h_new

        # ---- fc_out on the top-layer hidden (vocab axis padded to 128) ---
        pred_ref[...] = (jnp.dot(h_new, wfc_ref[...],
                                 preferred_element_type=jnp.float32)
                         + bfc_ref[...])

    return kernel


# ---------------------------------------------------------------------------
# Decoder: parameter init + forward
# ---------------------------------------------------------------------------
def init_decoder_params(key, output_dim, emb_dim, hidden_dim, n_layers):
    H = hidden_dim
    in_dim = max(emb_dim, H)                 # shared feature width for stacking
    v_pad = _round_up(output_dim, 128)       # padded vocab (one-hot lookup)
    o_pad = _round_up(output_dim, 128)       # padded vocab (fc_out)
    keys = jax.random.split(key, 3 + 4 * n_layers)
    scale = 0.1

    emb = scale * jax.random.normal(keys[0], (output_dim, emb_dim), jnp.float32)
    w_fc = scale * jax.random.normal(keys[1], (H, output_dim), jnp.float32)
    b_fc = scale * jax.random.normal(keys[2], (output_dim,), jnp.float32)

    wx_stack, wh_stack, b_stack = [], [], []
    for l in range(n_layers):
        d = emb_dim if l == 0 else H
        k0, k1, k2, k3 = keys[3 + 4 * l: 7 + 4 * l]
        # Per-gate (4, D, H) weights (PyTorch order [i,f,g,o], pre-transposed),
        # then packed to gate-concatenated (D, 4H).
        w_ih = scale * jax.random.normal(k0, (4, d, H), jnp.float32)
        w_hh = scale * jax.random.normal(k1, (4, H, H), jnp.float32)
        b_ih = scale * jax.random.normal(k2, (4, H), jnp.float32)
        b_hh = scale * jax.random.normal(k3, (4, H), jnp.float32)
        wx = _pack_gates(w_ih)                                   # (d, 4H)
        wx_stack.append(jnp.pad(wx, ((0, in_dim - d), (0, 0))))  # (in_dim, 4H)
        wh_stack.append(_pack_gates(w_hh))                       # (H, 4H)
        b_stack.append(
            _pack_gates((b_ih + b_hh)[:, None, :]).reshape(1, 4 * H))

    params = {
        # Embedding table zero-padded to (v_pad, in_dim) for the one-hot
        # in-kernel lookup matmul.
        "emb": jnp.pad(emb, ((0, v_pad - output_dim), (0, in_dim - emb_dim))),
        "w_x": jnp.stack(wx_stack, 0),       # (L, in_dim, 4H)
        "w_h": jnp.stack(wh_stack, 0),       # (L, H, 4H)
        "b": jnp.stack(b_stack, 0),          # (L, 1, 4H)
        # fc weight/bias zero-padded on the vocab axis (lane-dense output).
        "w_fc": jnp.pad(w_fc, ((0, 0), (0, o_pad - output_dim))),   # (H, o_pad)
        "b_fc": jnp.pad(b_fc, (0, o_pad - output_dim)).reshape(1, o_pad),
    }
    return params


def decoder_forward(params, input_token, hidden, *, n_layers, hidden_dim,
                    output_dim):
    """Mirrors Decoder.forward (cell_type='lstm', eval-mode semantics).

    input_token : (B,) int32 token ids
    hidden      : tuple (h0, c0), each (n_layers, B, H)
    returns     : (prediction (B, output_dim), (h_new, c_new))
    """
    h0, c0 = hidden
    H = hidden_dim
    B = input_token.shape[0]
    v_pad, in_dim = params["emb"].shape
    o_pad = params["w_fc"].shape[1]

    tok2d = input_token.astype(jnp.int32).reshape(B, 1)
    vmem = pl.BlockSpec(memory_space=pltpu.MemorySpace.VMEM)

    inputs = [tok2d, h0, c0, params["emb"], params["w_x"], params["w_h"],
              params["b"], params["w_fc"], params["b_fc"]]

    pred_pad, h_new, c_new = pl.pallas_call(
        _make_decoder_step_kernel(n_layers, H, v_pad, in_dim),
        out_shape=(
            jax.ShapeDtypeStruct((B, o_pad), jnp.float32),
            jax.ShapeDtypeStruct((n_layers, B, H), jnp.float32),
            jax.ShapeDtypeStruct((n_layers, B, H), jnp.float32),
        ),
        in_specs=[vmem] * len(inputs),
        out_specs=(vmem, vmem, vmem),
        # In-place state update: h0 -> h_new, c0 -> c_new.
        input_output_aliases={1: 1, 2: 2},
    )(*inputs)

    return pred_pad[:, :output_dim], (h_new, c_new)


# ---------------------------------------------------------------------------
# Pure-JAX reference (same packed parameters) for correctness checking
# ---------------------------------------------------------------------------
def decoder_forward_ref(params, input_token, hidden, *, n_layers, hidden_dim,
                        output_dim):
    H = hidden_dim
    h0, c0 = hidden
    in_dim = params["emb"].shape[1]
    x = jnp.take(params["emb"], input_token, axis=0)             # (B, in_dim)
    hs, cs = [], []
    for l in range(n_layers):
        z = (jnp.dot(x, params["w_x"][l], preferred_element_type=jnp.float32)
             + jnp.dot(h0[l], params["w_h"][l],
                       preferred_element_type=jnp.float32)
             + params["b"][l])
        zs = jax.nn.sigmoid(z[:, :3 * H])
        g = jnp.tanh(z[:, 3 * H:])
        i, f, o = zs[:, :H], zs[:, H:2 * H], zs[:, 2 * H:3 * H]
        c_new = f * c0[l] + i * g
        h_new = o * jnp.tanh(c_new)
        hs.append(h_new)
        cs.append(c_new)
        x = jnp.pad(h_new, ((0, 0), (0, in_dim - H))) if H < in_dim else h_new
    pred = (jnp.dot(hs[-1], params["w_fc"], preferred_element_type=jnp.float32)
            + params["b_fc"])[:, :output_dim]
    return pred, (jnp.stack(hs, 0), jnp.stack(cs, 0))


# ---------------------------------------------------------------------------
if __name__ == "__main__":
    OUTPUT_DIM = 50      # vocab size
    EMB_DIM = 16
    HIDDEN_DIM = 32
    N_LAYERS = 2
    BATCH = 4

    key = jax.random.PRNGKey(0)
    k_params, k_tok, k_h, k_c = jax.random.split(key, 4)

    params = init_decoder_params(k_params, OUTPUT_DIM, EMB_DIM, HIDDEN_DIM,
                                 N_LAYERS)

    input_token = jax.random.randint(k_tok, (BATCH,), 0, OUTPUT_DIM,
                                     dtype=jnp.int32)
    h0 = 0.1 * jax.random.normal(k_h, (N_LAYERS, BATCH, HIDDEN_DIM),
                                 jnp.float32)
    c0 = 0.1 * jax.random.normal(k_c, (N_LAYERS, BATCH, HIDDEN_DIM),
                                 jnp.float32)

    fwd = jax.jit(functools.partial(decoder_forward, n_layers=N_LAYERS,
                                    hidden_dim=HIDDEN_DIM,
                                    output_dim=OUTPUT_DIM))
    prediction, (h_new, c_new) = fwd(params, input_token, (h0, c0))
    jax.block_until_ready((prediction, h_new, c_new))

    assert prediction.shape == (BATCH, OUTPUT_DIM)
    assert h_new.shape == (N_LAYERS, BATCH, HIDDEN_DIM)
    assert c_new.shape == (N_LAYERS, BATCH, HIDDEN_DIM)

    # Numerical check against the plain-JAX reference.
    pred_ref, (h_ref, c_ref) = decoder_forward_ref(
        params, input_token, (h0, c0), n_layers=N_LAYERS,
        hidden_dim=HIDDEN_DIM, output_dim=OUTPUT_DIM)
    assert jnp.allclose(prediction, pred_ref, atol=1e-3, rtol=1e-3)
    assert jnp.allclose(h_new, h_ref, atol=1e-3, rtol=1e-3)
    assert jnp.allclose(c_new, c_ref, atol=1e-3, rtol=1e-3)

    print("KERNEL_OK")
</pallas_src>

<mosaic_0001>
module attributes {stable_mosaic.version = 11 : i64} {
  func.func @kernel(%arg0: memref<4x1xi32, #tpu.memory_space<vmem>>, %arg1: memref<2x4x32xf32, #tpu.memory_space<vmem>>, %arg2: memref<2x4x32xf32, #tpu.memory_space<vmem>>, %arg3: memref<128x32xf32, #tpu.memory_space<vmem>>, %arg4: memref<2x32x128xf32, #tpu.memory_space<vmem>>, %arg5: memref<2x32x128xf32, #tpu.memory_space<vmem>>, %arg6: memref<2x1x128xf32, #tpu.memory_space<vmem>>, %arg7: memref<32x128xf32, #tpu.memory_space<vmem>>, %arg8: memref<1x128xf32, #tpu.memory_space<vmem>>, %arg9: memref<4x128xf32, #tpu.memory_space<vmem>>, %arg10: memref<2x4x32xf32, #tpu.memory_space<vmem>>, %arg11: memref<2x4x32xf32, #tpu.memory_space<vmem>>) attributes {dimension_semantics = [], scalar_prefetch = 0 : i64, scratch_operands = 0 : i64, tpu.core_type = #tpu.core_type<tc>} {
    %c0 = arith.constant 0 : index
    %c0_0 = arith.constant 0 : index
    %0 = vector.load %arg0[%c0, %c0_0] : memref<4x1xi32, #tpu.memory_space<vmem>>, vector<4x1xi32>
    %1 = tpu.iota {dimensions = array<i32: 1>} : vector<4x128xi32>
    %2 = vector.broadcast %0 : vector<4x1xi32> to vector<4x128xi32>
    %3 = arith.cmpi eq, %1, %2 : vector<4x128xi32>
    %4 = arith.extui %3 : vector<4x128xi1> to vector<4x128xi32>
    %5 = arith.sitofp %4 : vector<4x128xi32> to vector<4x128xf32>
    %c0_1 = arith.constant 0 : index
    %c0_2 = arith.constant 0 : index
    %6 = vector.load %arg3[%c0_1, %c0_2] : memref<128x32xf32, #tpu.memory_space<vmem>>, vector<128x32xf32>
    %cst = arith.constant dense<0.000000e+00> : vector<4x32xf32>
    %7 = tpu.matmul %5, %6, %cst {dimension_numbers = #tpu.dot_dimension_numbers<[1], [0], [0], [1], [0, 0, 1, 1], [], []>} : vector<4x128xf32>, vector<128x32xf32>, vector<4x32xf32> -> vector<4x32xf32>
    %c0_3 = arith.constant 0 : index
    %c0_4 = arith.constant 0 : index
    %c0_5 = arith.constant 0 : index
    %8 = vector.load %arg1[%c0_3, %c0_4, %c0_5] : memref<2x4x32xf32, #tpu.memory_space<vmem>>, vector<1x4x32xf32>
    %9 = vector.shape_cast %8 : vector<1x4x32xf32> to vector<4x32xf32>
    %c0_6 = arith.constant 0 : index
    %c0_7 = arith.constant 0 : index
    %c0_8 = arith.constant 0 : index
    %10 = vector.load %arg2[%c0_6, %c0_7, %c0_8] : memref<2x4x32xf32, #tpu.memory_space<vmem>>, vector<1x4x32xf32>
    %11 = vector.shape_cast %10 : vector<1x4x32xf32> to vector<4x32xf32>
    %c0_9 = arith.constant 0 : index
    %c0_10 = arith.constant 0 : index
    %c0_11 = arith.constant 0 : index
    %12 = vector.load %arg4[%c0_9, %c0_10, %c0_11] : memref<2x32x128xf32, #tpu.memory_space<vmem>>, vector<1x32x128xf32>
    %13 = vector.shape_cast %12 : vector<1x32x128xf32> to vector<32x128xf32>
    %cst_12 = arith.constant dense<0.000000e+00> : vector<4x128xf32>
    %14 = tpu.matmul %7, %13, %cst_12 {dimension_numbers = #tpu.dot_dimension_numbers<[1], [0], [0], [1], [0, 0, 1, 1], [], []>} : vector<4x32xf32>, vector<32x128xf32>, vector<4x128xf32> -> vector<4x128xf32>
    %c0_13 = arith.constant 0 : index
    %c0_14 = arith.constant 0 : index
    %c0_15 = arith.constant 0 : index
    %15 = vector.load %arg5[%c0_13, %c0_14, %c0_15] : memref<2x32x128xf32, #tpu.memory_space<vmem>>, vector<1x32x128xf32>
    %16 = vector.shape_cast %15 : vector<1x32x128xf32> to vector<32x128xf32>
    %cst_16 = arith.constant dense<0.000000e+00> : vector<4x128xf32>
    %17 = tpu.matmul %9, %16, %cst_16 {dimension_numbers = #tpu.dot_dimension_numbers<[1], [0], [0], [1], [0, 0, 1, 1], [], []>} : vector<4x32xf32>, vector<32x128xf32>, vector<4x128xf32> -> vector<4x128xf32>
    %18 = arith.addf %14, %17 : vector<4x128xf32>
    %c0_17 = arith.constant 0 : index
    %c0_18 = arith.constant 0 : index
    %c0_19 = arith.constant 0 : index
    %19 = vector.load %arg6[%c0_17, %c0_18, %c0_19] : memref<2x1x128xf32, #tpu.memory_space<vmem>>, vector<1x1x128xf32>
    %20 = vector.shape_cast %19 : vector<1x1x128xf32> to vector<1x128xf32>
    %21 = vector.broadcast %20 : vector<1x128xf32> to vector<4x128xf32>
    %22 = arith.addf %18, %21 : vector<4x128xf32>
    %23 = vector.extract_strided_slice %22 {offsets = [0, 0], sizes = [4, 96], strides = [1, 1]} : vector<4x128xf32> to vector<4x96xf32>
    %24 = arith.negf %23 : vector<4x96xf32>
    %25 = math.exp %24 : vector<4x96xf32>
    %cst_20 = arith.constant 1.000000e+00 : f32
    %26 = vector.broadcast %cst_20 : f32 to vector<4x96xf32>
    %27 = arith.addf %26, %25 : vector<4x96xf32>
    %28 = arith.divf %26, %27 : vector<4x96xf32>
    %29 = vector.extract_strided_slice %22 {offsets = [0, 96], sizes = [4, 32], strides = [1, 1]} : vector<4x128xf32> to vector<4x32xf32>
    %30 = math.tanh %29 : vector<4x32xf32>
    %31 = vector.extract_strided_slice %28 {offsets = [0, 0], sizes = [4, 32], strides = [1, 1]} : vector<4x96xf32> to vector<4x32xf32>
    %32 = vector.extract_strided_slice %28 {offsets = [0, 32], sizes = [4, 32], strides = [1, 1]} : vector<4x96xf32> to vector<4x32xf32>
    %33 = vector.extract_strided_slice %28 {offsets = [0, 64], sizes = [4, 32], strides = [1, 1]} : vector<4x96xf32> to vector<4x32xf32>
    %34 = arith.mulf %32, %11 : vector<4x32xf32>
    %35 = arith.mulf %31, %30 : vector<4x32xf32>
    %36 = arith.addf %34, %35 : vector<4x32xf32>
    %37 = math.tanh %36 : vector<4x32xf32>
    %38 = arith.mulf %33, %37 : vector<4x32xf32>
    %c0_21 = arith.constant 0 : index
    %c0_22 = arith.constant 0 : index
    %c0_23 = arith.constant 0 : index
    %39 = vector.load %arg10[%c0_21, %c0_22, %c0_23] : memref<2x4x32xf32, #tpu.memory_space<vmem>>, vector<1x4x32xf32>
    %40 = vector.shape_cast %39 : vector<1x4x32xf32> to vector<4x32xf32>
    %41 = vector.shape_cast %38 : vector<4x32xf32> to vector<1x4x32xf32>
    tpu.vector_store %arg10[%c0_21, %c0_22, %c0_23], %41 {strides = array<i32>} : memref<2x4x32xf32, #tpu.memory_space<vmem>>, vector<1x4x32xf32>,
    %c0_24 = arith.constant 0 : index
    %c0_25 = arith.constant 0 : index
    %c0_26 = arith.constant 0 : index
    %42 = vector.load %arg11[%c0_24, %c0_25, %c0_26] : memref<2x4x32xf32, #tpu.memory_space<vmem>>, vector<1x4x32xf32>
    %43 = vector.shape_cast %42 : vector<1x4x32xf32> to vector<4x32xf32>
    %44 = vector.shape_cast %36 : vector<4x32xf32> to vector<1x4x32xf32>
    tpu.vector_store %arg11[%c0_24, %c0_25, %c0_26], %44 {strides = array<i32>} : memref<2x4x32xf32, #tpu.memory_space<vmem>>, vector<1x4x32xf32>,
    %c1 = arith.constant 1 : index
    %c0_27 = arith.constant 0 : index
    %c0_28 = arith.constant 0 : index
    %45 = vector.load %arg1[%c1, %c0_27, %c0_28] : memref<2x4x32xf32, #tpu.memory_space<vmem>>, vector<1x4x32xf32>
    %46 = vector.shape_cast %45 : vector<1x4x32xf32> to vector<4x32xf32>
    %c1_29 = arith.constant 1 : index
    %c0_30 = arith.constant 0 : index
    %c0_31 = arith.constant 0 : index
    %47 = vector.load %arg2[%c1_29, %c0_30, %c0_31] : memref<2x4x32xf32, #tpu.memory_space<vmem>>, vector<1x4x32xf32>
    %48 = vector.shape_cast %47 : vector<1x4x32xf32> to vector<4x32xf32>
    %c1_32 = arith.constant 1 : index
    %c0_33 = arith.constant 0 : index
    %c0_34 = arith.constant 0 : index
    %49 = vector.load %arg4[%c1_32, %c0_33, %c0_34] : memref<2x32x128xf32, #tpu.memory_space<vmem>>, vector<1x32x128xf32>
    %50 = vector.shape_cast %49 : vector<1x32x128xf32> to vector<32x128xf32>
    %cst_35 = arith.constant dense<0.000000e+00> : vector<4x128xf32>
    %51 = tpu.matmul %38, %50, %cst_35 {dimension_numbers = #tpu.dot_dimension_numbers<[1], [0], [0], [1], [0, 0, 1, 1], [], []>} : vector<4x32xf32>, vector<32x128xf32>, vector<4x128xf32> -> vector<4x128xf32>
    %c1_36 = arith.constant 1 : index
    %c0_37 = arith.constant 0 : index
    %c0_38 = arith.constant 0 : index
    %52 = vector.load %arg5[%c1_36, %c0_37, %c0_38] : memref<2x32x128xf32, #tpu.memory_space<vmem>>, vector<1x32x128xf32>
    %53 = vector.shape_cast %52 : vector<1x32x128xf32> to vector<32x128xf32>
    %cst_39 = arith.constant dense<0.000000e+00> : vector<4x128xf32>
    %54 = tpu.matmul %46, %53, %cst_39 {dimension_numbers = #tpu.dot_dimension_numbers<[1], [0], [0], [1], [0, 0, 1, 1], [], []>} : vector<4x32xf32>, vector<32x128xf32>, vector<4x128xf32> -> vector<4x128xf32>
    %55 = arith.addf %51, %54 : vector<4x128xf32>
    %c1_40 = arith.constant 1 : index
    %c0_41 = arith.constant 0 : index
    %c0_42 = arith.constant 0 : index
    %56 = vector.load %arg6[%c1_40, %c0_41, %c0_42] : memref<2x1x128xf32, #tpu.memory_space<vmem>>, vector<1x1x128xf32>
    %57 = vector.shape_cast %56 : vector<1x1x128xf32> to vector<1x128xf32>
    %58 = vector.broadcast %57 : vector<1x128xf32> to vector<4x128xf32>
    %59 = arith.addf %55, %58 : vector<4x128xf32>
    %60 = vector.extract_strided_slice %59 {offsets = [0, 0], sizes = [4, 96], strides = [1, 1]} : vector<4x128xf32> to vector<4x96xf32>
    %61 = arith.negf %60 : vector<4x96xf32>
    %62 = math.exp %61 : vector<4x96xf32>
    %cst_43 = arith.constant 1.000000e+00 : f32
    %63 = vector.broadcast %cst_43 : f32 to vector<4x96xf32>
    %64 = arith.addf %63, %62 : vector<4x96xf32>
    %65 = arith.divf %63, %64 : vector<4x96xf32>
    %66 = vector.extract_strided_slice %59 {offsets = [0, 96], sizes = [4, 32], strides = [1, 1]} : vector<4x128xf32> to vector<4x32xf32>
    %67 = math.tanh %66 : vector<4x32xf32>
    %68 = vector.extract_strided_slice %65 {offsets = [0, 0], sizes = [4, 32], strides = [1, 1]} : vector<4x96xf32> to vector<4x32xf32>
    %69 = vector.extract_strided_slice %65 {offsets = [0, 32], sizes = [4, 32], strides = [1, 1]} : vector<4x96xf32> to vector<4x32xf32>
    %70 = vector.extract_strided_slice %65 {offsets = [0, 64], sizes = [4, 32], strides = [1, 1]} : vector<4x96xf32> to vector<4x32xf32>
    %71 = arith.mulf %69, %48 : vector<4x32xf32>
    %72 = arith.mulf %68, %67 : vector<4x32xf32>
    %73 = arith.addf %71, %72 : vector<4x32xf32>
    %74 = math.tanh %73 : vector<4x32xf32>
    %75 = arith.mulf %70, %74 : vector<4x32xf32>
    %c1_44 = arith.constant 1 : index
    %c0_45 = arith.constant 0 : index
    %c0_46 = arith.constant 0 : index
    %76 = vector.load %arg10[%c1_44, %c0_45, %c0_46] : memref<2x4x32xf32, #tpu.memory_space<vmem>>, vector<1x4x32xf32>
    %77 = vector.shape_cast %76 : vector<1x4x32xf32> to vector<4x32xf32>
    %78 = vector.shape_cast %75 : vector<4x32xf32> to vector<1x4x32xf32>
    tpu.vector_store %arg10[%c1_44, %c0_45, %c0_46], %78 {strides = array<i32>} : memref<2x4x32xf32, #tpu.memory_space<vmem>>, vector<1x4x32xf32>,
    %c1_47 = arith.constant 1 : index
    %c0_48 = arith.constant 0 : index
    %c0_49 = arith.constant 0 : index
    %79 = vector.load %arg11[%c1_47, %c0_48, %c0_49] : memref<2x4x32xf32, #tpu.memory_space<vmem>>, vector<1x4x32xf32>
    %80 = vector.shape_cast %79 : vector<1x4x32xf32> to vector<4x32xf32>
    %81 = vector.shape_cast %73 : vector<4x32xf32> to vector<1x4x32xf32>
    tpu.vector_store %arg11[%c1_47, %c0_48, %c0_49], %81 {strides = array<i32>} : memref<2x4x32xf32, #tpu.memory_space<vmem>>, vector<1x4x32xf32>,
    %c0_50 = arith.constant 0 : index
    %c0_51 = arith.constant 0 : index
    %82 = vector.load %arg7[%c0_50, %c0_51] : memref<32x128xf32, #tpu.memory_space<vmem>>, vector<32x128xf32>
    %cst_52 = arith.constant dense<0.000000e+00> : vector<4x128xf32>
    %83 = tpu.matmul %75, %82, %cst_52 {dimension_numbers = #tpu.dot_dimension_numbers<[1], [0], [0], [1], [0, 0, 1, 1], [], []>} : vector<4x32xf32>, vector<32x128xf32>, vector<4x128xf32> -> vector<4x128xf32>
    %c0_53 = arith.constant 0 : index
    %c0_54 = arith.constant 0 : index
    %84 = vector.load %arg8[%c0_53, %c0_54] : memref<1x128xf32, #tpu.memory_space<vmem>>, vector<1x128xf32>
    %85 = vector.broadcast %84 : vector<1x128xf32> to vector<4x128xf32>
    %86 = arith.addf %83, %85 : vector<4x128xf32>
    %c0_55 = arith.constant 0 : index
    %c0_56 = arith.constant 0 : index
    %87 = vector.load %arg9[%c0_55, %c0_56] : memref<4x128xf32, #tpu.memory_space<vmem>>, vector<4x128xf32>
    tpu.vector_store %arg9[%c0_55, %c0_56], %86 {strides = array<i32>} : memref<4x128xf32, #tpu.memory_space<vmem>>, vector<4x128xf32>,
    return
  }
}

</mosaic_0001>

<bundles_post_ra>
// kernel: decoder_forward.1
= control target key start
LH: loop header
LB: loop body
LE: loop exit
PB: predicated region body
PF: predicated region fallthrough
CT: control target
= control target key end

     0   :  { %v910_v3 = vmov 0   ;;  %v911_v4 = vmov 0.0|0.0   ;;  %vm912_vm0 = vmmov 0   ;;  %v913_v8 = vmov 0.0   ;;  %s1188_s0 = inlined_call_operand.vmem [shape: s32[4,1], index: 0, kind: input, shape index: {}]   ;;  %s1189_s1 = inlined_call_operand.vmem [shape: f32[2,4,32], index: 1, kind: input, shape index: {}, may-alias: {1,10}]   ;;  %s1190_s2 = inlined_call_operand.vmem [shape: f32[2,4,32], index: 2, kind: input, shape index: {}, may-alias: {2,11}]   ;;  %s1191_s3 = inlined_call_operand.vmem [shape: f32[128,32], index: 3, kind: input, shape index: {}]   ;;  %s1192_s4 = inlined_call_operand.vmem [shape: f32[2,32,128], index: 4, kind: input, shape index: {}]   ;;  %s1193_s5 = inlined_call_operand.vmem [shape: f32[2,32,128], index: 5, kind: input, shape index: {}]   ;;  %s1194_s6 = inlined_call_operand.vmem [shape: f32[2,1,128], index: 6, kind: input, shape index: {}]   ;;  %s1195_s7 = inlined_call_operand.vmem [shape: f32[32,128], index: 7, kind: input, shape index: {}]   ;;  %s1196_s8 = inlined_call_operand.vmem [shape: f32[1,128], index: 8, kind: input, shape index: {}]   ;;  %s1197_s9 = inlined_call_operand.hbm [shape: f32[4,128], index: 9, kind: output, shape index: {0}]   ;;  %s1198_s10 = inlined_call_operand.vmem [shape: f32[2,4,32], index: 10, kind: output, shape index: {1}, may-alias: {1,10}]   ;;  %s1199_s11 = inlined_call_operand.vmem [shape: f32[2,4,32], index: 11, kind: output, shape index: {2}, may-alias: {2,11}]  }
   0x1   :  { %v36_v0 = vld [vmem:[%s1188_s0] sm:$0xf]  ;;  %v46_v2 = vld [vmem:[%s1191_s3 + $0x8] sm:$0xff]  ;;  %869 = vset.pattern.permute.xlu0 %v910_v3  ;;  %806 = vmatprep.subr.bf16.mxu0 %v911_v4  ;;  %v47_v6 = vld [vmem:[%s1191_s3 + $0x10] sm:$0xff] }
   0x2   :  { %v45_v1 = vld [vmem:[%s1191_s3] sm:$0xff]  ;;  %v48_v7 = vld [vmem:[%s1191_s3 + $0x18] sm:$0xff]  ;;  %40 = vperm.xlu0 %869, %v36_v0   ;;  %748 = vmatprep.mubr.msk.f32.mxu0 %vm912_vm0, %v913_v8  ;;  %v50_v11 = vld [vmem:[%s1191_s3 + $0x28] sm:$0xff] }
   0x3   :  { %v807_v5 = vpack.c.bf16 %v46_v2, %v45_v1  ;;  %v810_v9 = vpack.c.bf16 %v48_v7, %v47_v6  ;;  %830 = vmatprep.subr.bf16.mxu1 %v911_v4  ;;  %v49_v10 = vld [vmem:[%s1191_s3 + $0x20] sm:$0xff]  ;;  %759 = vmatprep.mubr.msk.f32.mxu1 %vm912_vm0, %v913_v8  ;;  %v138_v13 = vld [vmem:[%s1193_s5 + $0x8] sm:$0xff]  ;;  %v139_v14 = vld [vmem:[%s1193_s5 + $0x10] sm:$0xff] }
   0x4   :  { %v137_v12 = vld [vmem:[%s1193_s5] sm:$0xff]  ;;  %v140_v15 = vld [vmem:[%s1193_s5 + $0x18] sm:$0xff]  ;;  %v813_v16 = vpack.c.bf16 %v50_v11, %v49_v10  ;;  %v51_v18 = vld [vmem:[%s1191_s3 + $0x30] sm:$0xff] }
   0x5   :  { %808 = vmatpush3.bf16.msra.mxu0 %v807_v5  ;;  %v831_v17 = vpack.c.bf16 %v138_v13, %v137_v12  ;;  %v52_v19 = vld [vmem:[%s1191_s3 + $0x38] sm:$0xff] }
   0x6   :  { %809 = vmatprep.subr.bf16.mxu0 %v911_v4 }
   0x9   :  { %811 = vmatpush3.bf16.msra.mxu0 %v810_v9 }
   0xa   :  { %812 = vmatprep.subr.bf16.mxu0 %v911_v4 }
   0xb   :  { %17 = vsyncpa [#allocation3], 0  ;;  %832 = vmatpush3.bf16.msra.mxu1 %v831_v17  ;;  %v834_v20 = vpack.c.bf16 %v140_v15, %v139_v14  ;;  %v133_v21 = vld [vmem:[%s1192_s4] sm:$0xff]  ;;  %v134_v22 = vld [vmem:[%s1192_s4 + $0x8] sm:$0xff]  ;;  %v816_v23 = vpack.c.bf16 %v52_v19, %v51_v18  ;;  %vm141_vm1 = vcmask 261120   ;;  %v37_v41 = vlaneseq  ;;  %s917_s21 = smov 96  }
   0xc   :  { %833 = vmatprep.subr.bf16.mxu1 %v911_v4  ;;  %v53_v24 = vld [vmem:[%s1191_s3 + $0x40] sm:$0xff]  ;;  %v54_v25 = vld [vmem:[%s1191_s3 + $0x48] sm:$0xff]  ;;  %v837_v27 = vpack.c.bf16 %v134_v22, %v133_v21  ;;  %v135_v28 = vld [vmem:[%s1192_s4 + $0x10] sm:$0xff]  ;;  %v914_v44 = vmov 1.0   ;;  %vm328_vm3 = vcmask 257024   ;;  %s918_s26 = smov [#allocation2]  }
   0xd   :  { %814 = vmatpush3.bf16.msra.mxu0 %v813_v16  ;;  %v131_v26 = vld [vmem:[%s1189_s1] sm:$0xf]  ;;  %v136_v29 = vld [vmem:[%s1192_s4 + $0x18] sm:$0xff]  ;;  %v819_v30 = vpack.c.bf16 %v54_v25, %v53_v24  ;;  %v55_v31 = vld [vmem:[%s1191_s3 + $0x50] sm:$0xff]  ;;  %v38_v42 = vand.u32 127, %v37_v41  ;;  %s633_s27 = sshll.u32 %s918_s26, 4  ;;  %s634_s27 = int_to_ptr.vmem [resolvable:$true] %s633_s27 }
   0xe   :  { %815 = vmatprep.subr.bf16.mxu0 %v911_v4  ;;  %v56_v32 = vld [vmem:[%s1191_s3 + $0x58] sm:$0xff]  ;;  %v840_v33 = vpack.c.bf16 %v136_v29, %v135_v28  ;;  %v57_v35 = vld [vmem:[%s1191_s3 + $0x60] sm:$0xff]  ;;  %v58_v36 = vld [vmem:[%s1191_s3 + $0x68] sm:$0xff]  ;;  %p891_p1 = scmp.lt.s32.totalorder %s634_s27, %s634_s27 }
   0xf   :  { %835 = vmatpush3.bf16.msra.mxu1 %v834_v20  ;;  %v822_v34 = vpack.c.bf16 %v56_v32, %v55_v31  ;;  %v825_v37 = vpack.c.bf16 %v58_v36, %v57_v35  ;;  %v59_v38 = vld [vmem:[%s1191_s3 + $0x70] sm:$0xff]  ;;  %v60_v39 = vld [vmem:[%s1191_s3 + $0x78] sm:$0xff]  ;;  %v132_v45 = vld [vmem:[%s1190_s2] sm:$0xf]  ;;  %s915_s3 = smov 32  }
  0x10   :  { %836 = vmatprep.subr.bf16.mxu1 %v911_v4  ;;  %v828_v40 = vpack.c.bf16 %v60_v39, %v59_v38  ;;  %304 = vrot.lane.b32.xlu1 %v132_v45, %s915_s3  ;;  %v653_v51 = vld [vmem:[%s1194_s6] ss:$0 sm:$0xff]  ;;  %v662_v3 = vld [vmem:[%s1193_s5 + $0x28] sm:$0xff]  ;;  %v663_v5 = vld [vmem:[%s1193_s5 + $0x30] sm:$0xff] }
  0x11   :  { %817 = vmatpush3.bf16.msra.mxu0 %v816_v23  ;;  %v661_v2 = vld [vmem:[%s1193_s5 + $0x20] sm:$0xff]  ;;  %v664_v7 = vld [vmem:[%s1193_s5 + $0x38] sm:$0xff]  ;;  %v658_v11 = vld [vmem:[%s1192_s4 + $0x28] sm:$0xff] }
  0x12   :  { %818 = vmatprep.subr.bf16.mxu0 %v911_v4  ;;  %760 = vmatmul.mubr.msk.f32.vlgmr.msra.gmra.mrb[0].mxu1 %vm141_vm1, %v131_v26  ;;  %v843_v6 = vpack.c.bf16 %v662_v3, %v661_v2  ;;  %v846_v9 = vpack.c.bf16 %v664_v7, %v663_v5  ;;  %v657_v10 = vld [vmem:[%s1192_s4 + $0x20] sm:$0xff]  ;;  %v659_v14 = vld [vmem:[%s1192_s4 + $0x30] sm:$0xff]  ;;  %v660_v15 = vld [vmem:[%s1192_s4 + $0x38] sm:$0xff] }
  0x13   :  { %838 = vmatpush3.bf16.msra.mxu1 %v837_v27  ;;  %770 = vmatprep.mubr.msk.f32.mxu1 %vm912_vm0, %v913_v8  ;;  %v655_v12 = vld [vmem:[%s1189_s1 + $0x4] sm:$0xf]  ;;  %v849_v13 = vpack.c.bf16 %v658_v11, %v657_v10  ;;  %v852_v17 = vpack.c.bf16 %v660_v15, %v659_v14  ;;  %s916_s1 = smov 64   ;;  %v668_v24 = vld [vmem:[%s1194_s6 + $0x1] ss:$0 sm:$0xff]  ;;  %v545_v41 = vld [vmem:[%s1195_s7 + $0x10] sm:$0xff] }
  0x14   :  { %839 = vmatprep.subr.bf16.mxu1 %v911_v4  ;;  %v656_v20 = vld [vmem:[%s1190_s2 + $0x4] sm:$0xf] }
  0x15   :  { %820 = vmatpush3.bf16.msra.mxu0 %v819_v30  ;;  %v543_v39 = vld [vmem:[%s1195_s7] sm:$0xff] }
  0x16   :  { %821 = vmatprep.subr.bf16.mxu0 %v911_v4 }
  0x17   :  { %841 = vmatpush3.bf16.msra.mxu1 %v840_v33 }
  0x18   :  { %842 = vmatprep.subr.bf16.mxu1 %v911_v4 }
  0x19   :  { %823 = vmatpush3.bf16.msra.mxu0 %v822_v34 }
  0x1a   :  { %824 = vmatprep.subr.bf16.mxu0 %v911_v4 }
  0x1d   :  { %826 = vmatpush3.bf16.msra.mxu0 %v825_v37 }
  0x1e   :  { %827 = vmatprep.subr.bf16.mxu0 %v911_v4 }
  0x21   :  { %829 = vmatpush3.bf16.msra.mxu0 %v828_v40  ;;  %v544_v40 = vld [vmem:[%s1195_s7 + $0x8] sm:$0xff] }
  0x22   :  { %854 = vmatprep.subr.bf16.mxu0 %v911_v4 }
  0x81   :  { %v41_v43 = vpop.permute.xlu0 %40 }
  0x82   :  { %vm42_vm2 = vcmp.eq.s32.totalorder %v38_v42, %v41_v43  ;;  %v305_v62 = vpop.permute.xlu1 %304  ;;  %v855_v42 = vpack.c.bf16 %v544_v40, %v543_v39  ;;  %v546_v43 = vld [vmem:[%s1195_s7 + $0x18] sm:$0xff] }
  0x83   :  { %749 = vmatmul.mubr.msk.f32.vlgmr.msra.gmra.mrb[0].mxu0 %vm42_vm2, %v914_v44  ;;  %v858_v44 = vpack.c.bf16 %v546_v43, %v545_v41 }
  0x84   :  { %803 = vmatprep.mubr.msk.f32.mxu0 %vm912_vm0, %v913_v8  ;;  %856 = vmatpush3.bf16.msra.mxu0 %v855_v42 }
  0x85   :  { %857 = vmatprep.subr.bf16.mxu0 %v911_v4 }
  0x88   :  { %859 = vmatpush3.bf16.msra.mxu0 %v858_v44 }
  0xe5   :  { %v211_v46 = vpop.f32.mrb[0].mxu1 }
  0xe6   :  { %v761_v47 = vpop.f32.mrb[1].mxu1 }
 0x156   :  { %v127_v48 = vpop.f32.mrb[0].mxu0 }
 0x157   :  { %v750_v49 = vpop.f32.mrb[1].mxu0  ;;  %771 = vmatmul.mubr.msk.f32.vlgmr.msra.gmra.mrb[2].mxu1 %vm141_vm1, %v127_v48 }
 0x158   :  { %781 = vmatprep.mubr.msk.f32.mxu1 %vm912_vm0, %v913_v8  ;;  %844 = vmatpush3.bf16.msra.mxu1 %v843_v6 }
 0x159   :  { %845 = vmatprep.subr.bf16.mxu1 %v911_v4 }
 0x15c   :  { %847 = vmatpush3.bf16.msra.mxu1 %v846_v9 }
 0x15d   :  { %848 = vmatprep.subr.bf16.mxu1 %v911_v4 }
 0x15f   :  { %782 = vmatmul.mubr.msk.f32.vlgmr.msra.gmra.mrb[4].mxu1 %vm141_vm1, %v655_v12 }
 0x160   :  { %850 = vmatpush3.bf16.msra.mxu1 %v849_v13  ;;  %792 = vmatprep.mubr.msk.f32.mxu1 %vm912_vm0, %v913_v8 }
 0x161   :  { %851 = vmatprep.subr.bf16.mxu1 %v911_v4 }
 0x164   :  { %853 = vmatpush3.bf16.msra.mxu1 %v852_v17 }
 0x22a   :  { %v284_v50 = vpop.f32.mrb[2].mxu1 }
 0x22b   :  { %v285_v52 = vadd.f32 %v284_v50, %v211_v46  ;;  %v772_v53 = vpop.f32.mrb[3].mxu1  ;;  %v672_v50 = vld [vmem:[%s1196_s8] ss:$0 sm:$0xff] }
 0x22d   :  { %v295_v54 = vadd.f32 %v653_v51, %v285_v52 }
 0x22f   :  { %870 = vtanh.f32 %v295_v54  ;;  %v654_v56 = vmul.f32 -1.442695, %v295_v54 }
 0x231   :  { %872 = vpow2.f32 %v654_v56 }
 0x232   :  { %v418_v21 = vpop.f32.mrb[4].mxu1 }
 0x233   :  { %v783_v22 = vpop.f32.mrb[5].mxu1 }
 0x239   :  { %v871_v55 = vpop.eup %870 }
 0x23a   :  { %309 = vrot.lane.b32.xlu0 %v871_v55, %s915_s3 }
 0x23b   :  { %v873_v57 = vpop.eup %872 }
 0x23c   :  { %v299_v58 = vadd.f32 1.0, %v873_v57 }
 0x23e   :  { %874 = vrcp.f32 %v299_v58 }
 0x248   :  { %v875_v59 = vpop.eup %874 }
 0x249   :  { %v307_v63 = vmul.f32 %v875_v59, %v305_v62 }
 0x2ac   :  { %v310_v60 = vpop.permute.xlu0 %309 }
 0x2ad   :  { %v312_v61 = vmul.f32 %v875_v59, %v310_v60 }
 0x2af   :  { %314 = vrot.lane.b32.xlu1 %v312_v61, %s915_s3 }
 0x321   :  { %v315_v0 = vpop.permute.xlu1 %314 }
 0x322   :  { %v1092_v1 = vadd.f32 %v315_v0, %v307_v63 }
 0x324   :  { %876 = vtanh.f32 %v1092_v1 }
 0x32e   :  { %v877_v16 = vpop.eup %876 }
 0x32f   :  { %320 = vrot.lane.b32.xlu0 %v877_v16, %s915_s3 }
 0x3a1   :  { %v321_v18 = vpop.permute.xlu0 %320 }
 0x3a2   :  { %v323_v19 = vmul.f32 %v875_v59, %v321_v18 }
 0x3a4   :  { %325 = vrot.lane.b32.xlu1 %v323_v19, %s916_s1 }
 0x3a8   :  { %511 = vrot.lane.b32.xlu1 %v656_v20, %s915_s3 }
 0x416   :  { %v326_v23 = vpop.permute.xlu1 %325 }
 0x417   :  { %329 = vst.msk [vmem:[%s1198_s10] sm:$0xf] %vm328_vm3, %v326_v23  ;;  %793 = vmatmul.mubr.msk.f32.vlgmr.msra.gmra.mrb[6].mxu1 %vm141_vm1, %v326_v23 }
 0x41a   :  { %v512_v35 = vpop.permute.xlu1 %511 }
 0x4ea   :  { %v490_v8 = vpop.f32.mrb[6].mxu1 }
 0x4eb   :  { %v491_v25 = vadd.f32 %v490_v8, %v418_v21  ;;  %v794_v26 = vpop.f32.mrb[7].mxu1 }
 0x4ed   :  { %v502_v27 = vadd.f32 %v668_v24, %v491_v25 }
 0x4ef   :  { %878 = vtanh.f32 %v502_v27  ;;  %v669_v29 = vmul.f32 -1.442695, %v502_v27 }
 0x4f1   :  { %880 = vpow2.f32 %v669_v29 }
 0x4f9   :  { %v879_v28 = vpop.eup %878 }
 0x4fa   :  { %516 = vrot.lane.b32.xlu0 %v879_v28, %s915_s3 }
 0x4fb   :  { %v881_v30 = vpop.eup %880 }
 0x4fc   :  { %v506_v31 = vadd.f32 1.0, %v881_v30 }
 0x4fe   :  { %882 = vrcp.f32 %v506_v31 }
 0x508   :  { %v883_v32 = vpop.eup %882 }
 0x509   :  { %v514_v36 = vmul.f32 %v883_v32, %v512_v35 }
 0x56c   :  { %v517_v33 = vpop.permute.xlu0 %516 }
 0x56d   :  { %v519_v34 = vmul.f32 %v883_v32, %v517_v33 }
 0x56f   :  { %521 = vrot.lane.b32.xlu0 %v519_v34, %s915_s3 }
 0x5e1   :  { %v522_v37 = vpop.permute.xlu0 %521 }
 0x5e2   :  { %v524_v38 = vadd.f32 %v522_v37, %v514_v36 }
 0x5e4   :  { %884 = vtanh.f32 %v524_v38 }
 0x5ee   :  { %v885_v45 = vpop.eup %884 }
 0x5ef   :  { %527 = vrot.lane.b32.xlu1 %v885_v45, %s915_s3 }
 0x5f3   :  { %331 = vrot.lane.b32.xlu1 %v1092_v1, %s917_s21 }
 0x661   :  { %v528_v46 = vpop.permute.xlu1 %527 }
 0x662   :  { %v530_v47 = vmul.f32 %v883_v32, %v528_v46 }
 0x664   :  { %532 = vrot.lane.b32.xlu0 %v530_v47, %s916_s1 }
 0x665   :  { %v332_v48 = vpop.permute.xlu1 %331 }
 0x666   :  { %334 = vst.msk [vmem:[%s1199_s11] sm:$0xf] %vm328_vm3, %v332_v48 }
 0x668   :  { %538 = vrot.lane.b32.xlu0 %v524_v38, %s917_s21 }
 0x6d6   :  { %v533_v49 = vpop.permute.xlu0 %532 }
 0x6d7   :  { %670 = vst.msk [vmem:[%s1198_s10 + $0x4] sm:$0xf] %vm328_vm3, %v533_v49  ;;  %804 = vmatmul.mubr.msk.f32.vlgmr.msra.gmra.mrb[2].mxu0 %vm141_vm1, %v533_v49  ;;  %s886_s10 = scalar_lea.vmem %s634_s27, 64 }
 0x6d8   :  { %p887_p0 = scmp.ne.s32.totalorder %s634_s27, %s886_s10  ;;  %p892_p2 = scmp.lt.s32.totalorder %s886_s10, %s886_s10 }
 0x6da   :  { %v539_v4 = vpop.permute.xlu0 %538  ;;  %p893_p3 = por %p892_p2, %p891_p1 }
 0x6db   :  { %671 = vst.msk [vmem:[%s1199_s11 + $0x4] sm:$0xf] %vm328_vm3, %v539_v4 }
 0x6dc   :  { %p894_p4 = pnand %p893_p3, %p887_p0 }
 0x7aa   :  { %v622_v51 = vpop.f32.mrb[2].mxu0 }
 0x7ab   :  { %v623_v52 = vadd.f32 %v672_v50, %v622_v51  ;;  %v805_v53 = vpop.f32.mrb[3].mxu0 }
 0x7ad   :  { %626 = vst [vmem:[#allocation2] sm:$0xf] %v623_v52 }
 0x7ae   :  { %897 = shalt.err (!%p894_p4)
}
 0x7af   :  { %s898_s1 = scalar_lea.hbm %s1197_s9, 64 }
 0x7b0   :  { %p899_p5 = scmp.ne.s32.totalorder %s1197_s9, %s898_s1  ;;  %p902_p6 = scmp.lt.u32.totalorder %s898_s1, %s1197_s9 }
 0x7b2   :  { %p904_p7 = pnand %p902_p6, %p899_p5 }
 0x7b4   :  { %907 = shalt.err (!%p904_p7)
}
 0x7b5   :  { %636 = dma.vmem_to_hbm [thread:$0]  %s634_s27, 64, %s1197_s9, [#allocation3]  }
 0x7b6   :  { %908 = dma.done.wait [#allocation3], 64  }
 0x7b7   :  { %909 = vsyncadd [#allocation3], 4294967232 }
 0x7b8   :  { %648 = vsyncpa [#allocation3], 1 }

</bundles_post_ra>
